<compile_context>
chip_gen: v6e
topology: v6e:2x2x1
jax: 0.10.0
libtpu: 0.0.40
codegen_flags: <defaults>
</compile_context>

<pallas_src>
import math
import functools

import jax
import jax.numpy as jnp
from jax import lax
from jax.experimental import pallas as pl
from jax.experimental.pallas import tpu as pltpu


def _flash_attn_kernel(q_ref, k_ref, v_ref, o_ref, m_ref, l_ref, acc_ref, *, ch):
    # q_ref: (Hb, ch, Tq), k_ref/v_ref: (Hb, ch, Tk), o_ref: (Hb, ch, Tq)
    # scratch: m_ref/l_ref (Hb, Tq, 1) f32, acc_ref (Hb, Tq, ch) f32
    j = pl.program_id(2)

    @pl.when(j == 0)
    def _init():
        m_ref[...] = jnp.full_like(m_ref, -jnp.inf)
        l_ref[...] = jnp.zeros_like(l_ref)
        acc_ref[...] = jnp.zeros_like(acc_ref)

    # Combined scale 1/sqrt(ch) applied to q only (instead of ch^-0.25 on both
    # q and k); stays in the input dtype so bf16 inputs feed the MXU as bf16.
    scale = 1.0 / math.sqrt(ch)
    q = q_ref[...] * scale          # (Hb, ch, Tq)
    k = k_ref[...]                  # (Hb, ch, Tk)
    v = v_ref[...]                  # (Hb, ch, Tk)

    # logits[h, t, s] = sum_c q[h,c,t] * k[h,c,s]   (f32 accumulation on MXU)
    s = lax.dot_general(
        q, k,
        dimension_numbers=(((1,), (1,)), ((0,), (0,))),
        preferred_element_type=jnp.float32,
    )                               # (Hb, Tq, Tk)

    # Online softmax (f32): running max / running (unnormalized) sum.
    m_prev = m_ref[...]                                       # (Hb, Tq, 1)
    m_new = jnp.maximum(m_prev, jnp.max(s, axis=-1, keepdims=True))
    alpha = jnp.exp(m_prev - m_new)                           # (Hb, Tq, 1)
    p = jnp.exp(s - m_new)                                    # (Hb, Tq, Tk) f32

    l_ref[...] = alpha * l_ref[...] + jnp.sum(p, axis=-1, keepdims=True)

    # acc[h, t, c] += sum_s p[h,t,s] * v[h,c,s]
    # p is lhs (natural contraction on its last dim); only the small (ch, Tk)
    # v operand needs a layout change -- never the big (Tq, Tk) tile.
    pv = lax.dot_general(
        p.astype(v.dtype), v,
        dimension_numbers=(((2,), (2,)), ((0,), (0,))),
        preferred_element_type=jnp.float32,
    )                               # (Hb, Tq, ch)
    acc_ref[...] = alpha * acc_ref[...] + pv
    m_ref[...] = m_new

    @pl.when(j == pl.num_programs(2) - 1)
    def _finalize():
        # Deferred normalization: scale the small (Tq, ch) accumulator once,
        # using the approx (EUP) reciprocal.
        inv_l = pl.reciprocal(l_ref[...], approx=True)        # (Hb, Tq, 1)
        out_htc = acc_ref[...] * inv_l                        # (Hb, Tq, ch)
        # Small per-head transpose so the output store is (ch, Tq) lane-dense.
        o_ref[...] = jnp.swapaxes(out_htc, 1, 2).astype(o_ref.dtype)


def _pick_seq_tile(L, max_tile=512):
    """Largest 128-multiple tile <= max_tile dividing L, else the full length."""
    if L <= max_tile:
        return L
    if L % 128 != 0:
        # TODO(synk): ragged sequence lengths > max_tile fall back to a single
        # whole-length tile (no remainder masking implemented).
        return L
    t = (max_tile // 128) * 128
    while t >= 128:
        if L % t == 0:
            return t
        t -= 128
    return L


def _pick_head_block(B, L, max_hb=8):
    """Batch several heads per grid step when L is small (amortize step cost)."""
    cap = max(1, min(max_hb, 1024 // max(L, 1)))
    hb = 1
    for c in range(1, cap + 1):
        if B % c == 0:
            hb = c
    return hb


def qkv_attention_legacy(qkv, n_heads, *, max_seq_tile=512):
    """Pallas implementation of QKVAttentionLegacy.forward (mask/rel_pos = None)."""
    bs, width, length = qkv.shape
    assert width % (3 * n_heads) == 0
    ch = width // (3 * n_heads)
    B = bs * n_heads

    # Free reshape; q/k/v are selected via BlockSpec index maps (no HBM copies).
    x = qkv.reshape(B, 3, ch, length)

    tq = _pick_seq_tile(length, max_seq_tile)
    tk = _pick_seq_tile(length, max_seq_tile)
    hb = _pick_head_block(B, length)

    grid = (B // hb, length // tq, length // tk)

    def q_map(b, i, j):
        return (b, 0, 0, i)

    def k_map(b, i, j):
        return (b, 1, 0, j)

    def v_map(b, i, j):
        return (b, 2, 0, j)

    def o_map(b, i, j):
        return (b, 0, i)

    q_spec = pl.BlockSpec((hb, pl.Squeezed(), ch, tq), q_map)
    k_spec = pl.BlockSpec((hb, pl.Squeezed(), ch, tk), k_map)
    v_spec = pl.BlockSpec((hb, pl.Squeezed(), ch, tk), v_map)
    o_spec = pl.BlockSpec((hb, ch, tq), o_map)

    out = pl.pallas_call(
        functools.partial(_flash_attn_kernel, ch=ch),
        out_shape=jax.ShapeDtypeStruct((B, ch, length), qkv.dtype),
        grid_spec=pltpu.PrefetchScalarGridSpec(
            num_scalar_prefetch=0,
            grid=grid,
            in_specs=[q_spec, k_spec, v_spec],
            out_specs=o_spec,
            scratch_shapes=[
                pltpu.VMEM((hb, tq, 1), jnp.float32),   # running max
                pltpu.VMEM((hb, tq, 1), jnp.float32),   # running sum
                pltpu.VMEM((hb, tq, ch), jnp.float32),  # accumulator
            ],
        ),
        compiler_params=pltpu.CompilerParams(
            dimension_semantics=("parallel", "parallel", "arbitrary")),
    )(x, x, x)

    # TODO(synk): optional `mask` / `rel_pos` arguments of the PyTorch module
    # are not supported (reference path uses mask=None, rel_pos=None).

    return out.reshape(bs, n_heads * ch, length)


def _reference(qkv, n_heads):
    """Pure-JAX reference matching the PyTorch forward semantics."""
    bs, width, length = qkv.shape
    ch = width // (3 * n_heads)
    x = qkv.reshape(bs * n_heads, 3 * ch, length)
    q, k, v = x[:, :ch], x[:, ch:2 * ch], x[:, 2 * ch:]
    scale = 1.0 / math.sqrt(math.sqrt(ch))
    w = jnp.einsum('bct,bcs->bts', q * scale, k * scale)
    w = jax.nn.softmax(w.astype(jnp.float32), axis=-1).astype(w.dtype)
    out = jnp.einsum('bts,bcs->bct', w, v)
    return out.reshape(bs, -1, length)


if __name__ == "__main__":
    key = jax.random.PRNGKey(0)
    k0, k1 = jax.random.split(key)

    # Small smoke test (tiny shapes, single tile, batched heads per step).
    n_heads = 2
    bs, ch, length = 2, 16, 8
    width = 3 * n_heads * ch  # 96
    qkv_small = jax.random.normal(k0, (bs, width, length), dtype=jnp.float32)
    out_small = jax.block_until_ready(qkv_attention_legacy(qkv_small, n_heads))
    ref_small = _reference(qkv_small, n_heads)
    assert out_small.shape == (bs, n_heads * ch, length), out_small.shape
    assert jnp.allclose(out_small, ref_small, atol=2e-3, rtol=2e-3), \
        "small-shape mismatch vs reference"

    # Production-like shape exercising the tiled flash path (ch=64, L=1024,
    # 128-aligned tiles, multi-step kv reduction).
    n_heads2, bs2, ch2, length2 = 2, 1, 64, 1024
    width2 = 3 * n_heads2 * ch2  # 384
    qkv_big = jax.random.normal(k1, (bs2, width2, length2), dtype=jnp.float32)
    out_big = jax.block_until_ready(qkv_attention_legacy(qkv_big, n_heads2))
    ref_big = _reference(qkv_big, n_heads2)
    assert out_big.shape == (bs2, n_heads2 * ch2, length2), out_big.shape
    assert jnp.allclose(out_big, ref_big, atol=2e-3, rtol=2e-3), \
        "tiled-shape mismatch vs reference"

    print("KERNEL_OK")
</pallas_src>

<mosaic_0001>
module attributes {stable_mosaic.version = 11 : i64} {
  func.func @_flash_attn_kernel(%arg0: i32, %arg1: i32, %arg2: i32, %arg3: memref<4x1x16x8xf32, #tpu.memory_space<vmem>>, %arg4: memref<4x1x16x8xf32, #tpu.memory_space<vmem>>, %arg5: memref<4x1x16x8xf32, #tpu.memory_space<vmem>>, %arg6: memref<4x16x8xf32, #tpu.memory_space<vmem>>, %arg7: memref<4x8x1xf32, #tpu.memory_space<vmem>>, %arg8: memref<4x8x1xf32, #tpu.memory_space<vmem>>, %arg9: memref<4x8x16xf32, #tpu.memory_space<vmem>>) attributes {dimension_semantics = [#tpu.dimension_semantics<parallel>, #tpu.dimension_semantics<parallel>, #tpu.dimension_semantics<arbitrary>], iteration_bounds = array<i64: 1, 1, 1>, scalar_prefetch = 0 : i64, scratch_operands = 3 : i64, tpu.core_type = #tpu.core_type<tc>, window_params = [{transform_indices = @transform_0, window_bounds = array<i64: 4, 1, 16, 8>}, {transform_indices = @transform_1, window_bounds = array<i64: 4, 1, 16, 8>}, {transform_indices = @transform_2, window_bounds = array<i64: 4, 1, 16, 8>}, {transform_indices = @transform_3, window_bounds = array<i64: 4, 16, 8>}]} {
    %c0_i32 = arith.constant 0 : i32
    %0 = arith.cmpi eq, %arg2, %c0_i32 : i32
    %1 = arith.extui %0 : i1 to i32
    %c0_i32_0 = arith.constant 0 : i32
    %2 = arith.cmpi ne, %1, %c0_i32_0 : i32
    scf.if %2 {
      %cst_36 = arith.constant 0xFF800000 : f32
      %37 = vector.broadcast %cst_36 : f32 to vector<4x8x1xf32>
      %c0_37 = arith.constant 0 : index
      %c0_38 = arith.constant 0 : index
      %c0_39 = arith.constant 0 : index
      %38 = vector.load %arg7[%c0_37, %c0_38, %c0_39] : memref<4x8x1xf32, #tpu.memory_space<vmem>>, vector<4x8x1xf32>
      tpu.vector_store %arg7[%c0_37, %c0_38, %c0_39], %37 {strides = array<i32>} : memref<4x8x1xf32, #tpu.memory_space<vmem>>, vector<4x8x1xf32>,
      %cst_40 = arith.constant 0.000000e+00 : f32
      %39 = vector.broadcast %cst_40 : f32 to vector<4x8x1xf32>
      %c0_41 = arith.constant 0 : index
      %c0_42 = arith.constant 0 : index
      %c0_43 = arith.constant 0 : index
      %40 = vector.load %arg8[%c0_41, %c0_42, %c0_43] : memref<4x8x1xf32, #tpu.memory_space<vmem>>, vector<4x8x1xf32>
      tpu.vector_store %arg8[%c0_41, %c0_42, %c0_43], %39 {strides = array<i32>} : memref<4x8x1xf32, #tpu.memory_space<vmem>>, vector<4x8x1xf32>,
      %cst_44 = arith.constant 0.000000e+00 : f32
      %41 = vector.broadcast %cst_44 : f32 to vector<4x8x16xf32>
      %c0_45 = arith.constant 0 : index
      %c0_46 = arith.constant 0 : index
      %c0_47 = arith.constant 0 : index
      %42 = vector.load %arg9[%c0_45, %c0_46, %c0_47] : memref<4x8x16xf32, #tpu.memory_space<vmem>>, vector<4x8x16xf32>
      tpu.vector_store %arg9[%c0_45, %c0_46, %c0_47], %41 {strides = array<i32>} : memref<4x8x16xf32, #tpu.memory_space<vmem>>, vector<4x8x16xf32>,
    } else {
    }
    %c0 = arith.constant 0 : index
    %c0_1 = arith.constant 0 : index
    %c0_2 = arith.constant 0 : index
    %c0_3 = arith.constant 0 : index
    %3 = vector.load %arg3[%c0, %c0_1, %c0_2, %c0_3] : memref<4x1x16x8xf32, #tpu.memory_space<vmem>>, vector<4x1x16x8xf32>
    %4 = vector.shape_cast %3 : vector<4x1x16x8xf32> to vector<4x16x8xf32>
    %cst = arith.constant 2.500000e-01 : f32
    %5 = vector.broadcast %cst : f32 to vector<4x16x8xf32>
    %6 = arith.mulf %4, %5 : vector<4x16x8xf32>
    %c0_4 = arith.constant 0 : index
    %c0_5 = arith.constant 0 : index
    %c0_6 = arith.constant 0 : index
    %c0_7 = arith.constant 0 : index
    %7 = vector.load %arg4[%c0_4, %c0_5, %c0_6, %c0_7] : memref<4x1x16x8xf32, #tpu.memory_space<vmem>>, vector<4x1x16x8xf32>
    %8 = vector.shape_cast %7 : vector<4x1x16x8xf32> to vector<4x16x8xf32>
    %c0_8 = arith.constant 0 : index
    %c0_9 = arith.constant 0 : index
    %c0_10 = arith.constant 0 : index
    %c0_11 = arith.constant 0 : index
    %9 = vector.load %arg5[%c0_8, %c0_9, %c0_10, %c0_11] : memref<4x1x16x8xf32, #tpu.memory_space<vmem>>, vector<4x1x16x8xf32>
    %10 = vector.shape_cast %9 : vector<4x1x16x8xf32> to vector<4x16x8xf32>
    %cst_12 = arith.constant dense<0.000000e+00> : vector<4x8x8xf32>
    %11 = tpu.matmul %6, %8, %cst_12 {dimension_numbers = #tpu.dot_dimension_numbers<[1], [1], [2], [2], [0, 0, 0, 2, 1, 2], [0], [0]>} : vector<4x16x8xf32>, vector<4x16x8xf32>, vector<4x8x8xf32> -> vector<4x8x8xf32>
    %c0_13 = arith.constant 0 : index
    %c0_14 = arith.constant 0 : index
    %c0_15 = arith.constant 0 : index
    %12 = vector.load %arg7[%c0_13, %c0_14, %c0_15] : memref<4x8x1xf32, #tpu.memory_space<vmem>>, vector<4x8x1xf32>
    %cst_16 = arith.constant dense<0xFF800000> : vector<4x8xf32>
    %13 = vector.multi_reduction <maximumf>, %11, %cst_16 [2] : vector<4x8x8xf32> to vector<4x8xf32>
    %14 = vector.shape_cast %13 : vector<4x8xf32> to vector<4x8x1xf32>
    %15 = arith.maximumf %12, %14 : vector<4x8x1xf32>
    %16 = arith.subf %12, %15 : vector<4x8x1xf32>
    %17 = math.exp %16 : vector<4x8x1xf32>
    %18 = vector.broadcast %15 : vector<4x8x1xf32> to vector<4x8x8xf32>
    %19 = arith.subf %11, %18 : vector<4x8x8xf32>
    %20 = math.exp %19 : vector<4x8x8xf32>
    %c0_17 = arith.constant 0 : index
    %c0_18 = arith.constant 0 : index
    %c0_19 = arith.constant 0 : index
    %21 = vector.load %arg8[%c0_17, %c0_18, %c0_19] : memref<4x8x1xf32, #tpu.memory_space<vmem>>, vector<4x8x1xf32>
    %22 = arith.mulf %17, %21 : vector<4x8x1xf32>
    %cst_20 = arith.constant dense<0.000000e+00> : vector<4x8xf32>
    %23 = vector.multi_reduction <add>, %20, %cst_20 [2] : vector<4x8x8xf32> to vector<4x8xf32>
    %24 = vector.shape_cast %23 : vector<4x8xf32> to vector<4x8x1xf32>
    %25 = arith.addf %22, %24 : vector<4x8x1xf32>
    %c0_21 = arith.constant 0 : index
    %c0_22 = arith.constant 0 : index
    %c0_23 = arith.constant 0 : index
    %26 = vector.load %arg8[%c0_21, %c0_22, %c0_23] : memref<4x8x1xf32, #tpu.memory_space<vmem>>, vector<4x8x1xf32>
    tpu.vector_store %arg8[%c0_21, %c0_22, %c0_23], %25 {strides = array<i32>} : memref<4x8x1xf32, #tpu.memory_space<vmem>>, vector<4x8x1xf32>,
    %cst_24 = arith.constant dense<0.000000e+00> : vector<4x8x16xf32>
    %27 = tpu.matmul %20, %10, %cst_24 {dimension_numbers = #tpu.dot_dimension_numbers<[2], [2], [1], [1], [0, 0, 0, 1, 1, 1], [0], [0]>} : vector<4x8x8xf32>, vector<4x16x8xf32>, vector<4x8x16xf32> -> vector<4x8x16xf32>
    %c0_25 = arith.constant 0 : index
    %c0_26 = arith.constant 0 : index
    %c0_27 = arith.constant 0 : index
    %28 = vector.load %arg9[%c0_25, %c0_26, %c0_27] : memref<4x8x16xf32, #tpu.memory_space<vmem>>, vector<4x8x16xf32>
    %29 = vector.broadcast %17 : vector<4x8x1xf32> to vector<4x8x16xf32>
    %30 = arith.mulf %29, %28 : vector<4x8x16xf32>
    %31 = arith.addf %30, %27 : vector<4x8x16xf32>
    %c0_28 = arith.constant 0 : index
    %c0_29 = arith.constant 0 : index
    %c0_30 = arith.constant 0 : index
    %32 = vector.load %arg9[%c0_28, %c0_29, %c0_30] : memref<4x8x16xf32, #tpu.memory_space<vmem>>, vector<4x8x16xf32>
    tpu.vector_store %arg9[%c0_28, %c0_29, %c0_30], %31 {strides = array<i32>} : memref<4x8x16xf32, #tpu.memory_space<vmem>>, vector<4x8x16xf32>,
    %c0_31 = arith.constant 0 : index
    %c0_32 = arith.constant 0 : index
    %c0_33 = arith.constant 0 : index
    %33 = vector.load %arg7[%c0_31, %c0_32, %c0_33] : memref<4x8x1xf32, #tpu.memory_space<vmem>>, vector<4x8x1xf32>
    tpu.vector_store %arg7[%c0_31, %c0_32, %c0_33], %15 {strides = array<i32>} : memref<4x8x1xf32, #tpu.memory_space<vmem>>, vector<4x8x1xf32>,
    %c0_i32_34 = arith.constant 0 : i32
    %34 = arith.cmpi eq, %arg2, %c0_i32_34 : i32
    %35 = arith.extui %34 : i1 to i32
    %c0_i32_35 = arith.constant 0 : i32
    %36 = arith.cmpi ne, %35, %c0_i32_35 : i32
    scf.if %36 {
      %c0_36 = arith.constant 0 : index
      %c0_37 = arith.constant 0 : index
      %c0_38 = arith.constant 0 : index
      %37 = vector.load %arg8[%c0_36, %c0_37, %c0_38] : memref<4x8x1xf32, #tpu.memory_space<vmem>>, vector<4x8x1xf32>
      %38 = tpu.reciprocal %37 {approx = true} : vector<4x8x1xf32> -> vector<4x8x1xf32>
      %c0_39 = arith.constant 0 : index
      %c0_40 = arith.constant 0 : index
      %c0_41 = arith.constant 0 : index
      %39 = vector.load %arg9[%c0_39, %c0_40, %c0_41] : memref<4x8x16xf32, #tpu.memory_space<vmem>>, vector<4x8x16xf32>
      %40 = vector.broadcast %38 : vector<4x8x1xf32> to vector<4x8x16xf32>
      %41 = arith.mulf %39, %40 : vector<4x8x16xf32>
      %42 = tpu.transpose %41, [0, 2, 1] : vector<4x8x16xf32> -> vector<4x16x8xf32>
      %c0_42 = arith.constant 0 : index
      %c0_43 = arith.constant 0 : index
      %c0_44 = arith.constant 0 : index
      %43 = vector.load %arg6[%c0_42, %c0_43, %c0_44] : memref<4x16x8xf32, #tpu.memory_space<vmem>>, vector<4x16x8xf32>
      tpu.vector_store %arg6[%c0_42, %c0_43, %c0_44], %42 {strides = array<i32>} : memref<4x16x8xf32, #tpu.memory_space<vmem>>, vector<4x16x8xf32>,
    } else {
    }
    return
  }
  func.func @transform_0(%arg0: i32, %arg1: i32, %arg2: i32) -> (i32, i32, i32, i32) {
    %c0_i32 = arith.constant 0 : i32
    %c0_i32_0 = arith.constant 0 : i32
    %c0_i32_1 = arith.constant 0 : i32
    return %arg0, %c0_i32, %c0_i32_0, %arg1 : i32, i32, i32, i32
  }
  func.func @transform_1(%arg0: i32, %arg1: i32, %arg2: i32) -> (i32, i32, i32, i32) {
    %c1_i32 = arith.constant 1 : i32
    %c0_i32 = arith.constant 0 : i32
    %c0_i32_0 = arith.constant 0 : i32
    return %arg0, %c1_i32, %c0_i32, %arg2 : i32, i32, i32, i32
  }
  func.func @transform_2(%arg0: i32, %arg1: i32, %arg2: i32) -> (i32, i32, i32, i32) {
    %c2_i32 = arith.constant 2 : i32
    %c0_i32 = arith.constant 0 : i32
    %c0_i32_0 = arith.constant 0 : i32
    return %arg0, %c2_i32, %c0_i32, %arg2 : i32, i32, i32, i32
  }
  func.func @transform_3(%arg0: i32, %arg1: i32, %arg2: i32) -> (i32, i32, i32) {
    %c0_i32 = arith.constant 0 : i32
    %c0_i32_0 = arith.constant 0 : i32
    return %arg0, %c0_i32, %arg1 : i32, i32, i32
  }
}

</mosaic_0001>

<bundles_post_ra>
// kernel: tpu_custom_call.1
= control target key start
LH: loop header
LB: loop body
LE: loop exit
PB: predicated region body
PF: predicated region fallthrough
CT: control target
= control target key end

     0   :  { %vm218_vm0 = vcmask 130048   ;;  %v1459_v6 = vmov 0.0   ;;  %vm1460_vm1 = vmmov 0   ;;  %vm209_vm2 = vcmask 7168   ;;  %s1712_s0 = inlined_call_operand.vmem [shape: f32[4,3,16,8], index: 0, kind: input, shape index: {}]   ;;  %s1713_s1 = inlined_call_operand.vmem [shape: f32[4,3,16,8], index: 1, kind: input, shape index: {}]   ;;  %s1714_s2 = inlined_call_operand.vmem [shape: f32[4,3,16,8], index: 2, kind: input, shape index: {}]   ;;  %s1715_s3 = inlined_call_operand.vmem [shape: f32[4,16,8], index: 3, kind: output, shape index: {}]  }
   0x1   :  { %v56_v0 = vld [vmem:[%s1712_s0 + $0x30] sm:$0xff]  ;;  %v52_v1 = vld [vmem:[%s1712_s0] sm:$0xff]  ;;  %v58_v2 = vld [vmem:[%s1712_s0 + $0x38] sm:$0xff]  ;;  %1373 = vmatprep.subr.mxu0 %v1459_v6  ;;  %1380 = vmatprep.subr.mxu1 %v1459_v6  ;;  %219 = vst.msk [vmem:[#allocation4] sm:$0xff] %vm218_vm0, %v1459_v6  ;;  %v1461_v29 = vmov -inf   ;;  %vm680_vm3 = vcmask 64512  }
   0x2   :  { %v233_v3 = vmul.f32 0.25, %v56_v0  ;;  %v231_v4 = vmul.f32 0.25, %v52_v1  ;;  %v54_v5 = vld [vmem:[%s1712_s0 + $0x8] sm:$0xff]  ;;  %220 = vst.msk [vmem:[#allocation4 + $0x8] sm:$0xff] %vm218_vm0, %v1459_v6  ;;  %221 = vst.msk [vmem:[#allocation4 + $0x10] sm:$0xff] %vm218_vm0, %v1459_v6  ;;  %v1318_v7 = vld [vmem:[%s1713_s1 + $0x18] sm:$0xff]  ;;  %1377 = vmatprep.mubr.msk.f32.mxu0 %vm1460_vm1, %v1459_v6  ;;  %1384 = vmatprep.mubr.msk.f32.mxu1 %vm1460_vm1, %v1459_v6 }
   0x3   :  { %222 = vst.msk [vmem:[#allocation4 + $0x18] sm:$0xff] %vm218_vm0, %v1459_v6  ;;  %v234_v8 = vmul.f32 0.25, %v58_v2  ;;  %v232_v9 = vmul.f32 0.25, %v54_v5  ;;  %v1320_v10 = vld [vmem:[%s1713_s1 + $0x48] sm:$0xff]  ;;  %v1317_v11 = vld [vmem:[%s1713_s1 + $0x10] sm:$0xff]  ;;  %v60_v12 = vld [vmem:[%s1712_s0 + $0x60] sm:$0xff]  ;;  %1374 = vmatpush3.msra.mxu0 %v1318_v7 }
   0x4   :  { %361 = vxpose.xlu1.b32.start [1/2] (short) (narrow) %v233_v3, 8  ;;  %255 = vxpose.xlu0.b32.start [1/2] (short) (narrow) %v231_v4, 8  ;;  %v64_v13 = vld [vmem:[%s1712_s0 + $0x90] sm:$0xff]  ;;  %v1319_v14 = vld [vmem:[%s1713_s1 + $0x40] sm:$0xff]  ;;  %v235_v15 = vmul.f32 0.25, %v60_v12  ;;  %v62_v17 = vld [vmem:[%s1712_s0 + $0x68] sm:$0xff] }
   0x5   :  { %1381 = vmatpush3.msra.mxu1 %v1320_v10  ;;  %1375 = vmatprep.subr.mxu0 %v1459_v6  ;;  %v237_v16 = vmul.f32 0.25, %v64_v13  ;;  %v66_v18 = vld [vmem:[%s1712_s0 + $0x98] sm:$0xff]  ;;  %v236_v19 = vmul.f32 0.25, %v62_v17  ;;  %v1324_v24 = vld [vmem:[%s1713_s1 + $0xa8] sm:$0xff]  ;;  %v1321_v25 = vld [vmem:[%s1713_s1 + $0x70] sm:$0xff]  ;;  %211 = vst.msk [vmem:[#allocation2 + $0x8] sm:$0xff] %vm209_vm2, %v1461_v29 }
   0x6   :  { %1382 = vmatprep.subr.mxu1 %v1459_v6  ;;  %1376 = vmatpush3.msra.mxu0 %v1317_v11  ;;  %v238_v20 = vmul.f32 0.25, %v66_v18  ;;  %v1322_v21 = vld [vmem:[%s1713_s1 + $0x78] sm:$0xff]  ;;  %v1323_v26 = vld [vmem:[%s1713_s1 + $0xa0] sm:$0xff]  ;;  %210 = vst.msk [vmem:[#allocation2] sm:$0xff] %vm209_vm2, %v1461_v29  ;;  %212 = vst.msk [vmem:[#allocation2 + $0x10] sm:$0xff] %vm209_vm2, %v1461_v29  ;;  %v1462_v42 = vmov 0  }
   0x7   :  { %1383 = vmatpush3.msra.mxu1 %v1319_v14  ;;  %1387 = vmatprep.subr.mxu0 %v1459_v6  ;;  %213 = vst.msk [vmem:[#allocation2 + $0x18] sm:$0xff] %vm209_vm2, %v1461_v29  ;;  %214 = vst.msk [vmem:[#allocation3] sm:$0xff] %vm209_vm2, %v1459_v6  ;;  %v1326_v55 = vld [vmem:[%s1714_s2 + $0x28] sm:$0xff]  ;;  %v1328_v56 = vld [vmem:[%s1714_s2 + $0x58] sm:$0xff] }
   0x8   :  { %362 = vxpose.xlu1.b32.end [2/2] (short) (narrow) %v234_v8, 8  ;;  %256 = vxpose.xlu0.b32.end [2/2] (short) (narrow) %v232_v9, 8  ;;  %215 = vst.msk [vmem:[#allocation3 + $0x8] sm:$0xff] %vm209_vm2, %v1459_v6  ;;  %216 = vst.msk [vmem:[#allocation3 + $0x10] sm:$0xff] %vm209_vm2, %v1459_v6  ;;  %v1325_v60 = vld [vmem:[%s1714_s2 + $0x20] sm:$0xff]  ;;  %v1327_v61 = vld [vmem:[%s1714_s2 + $0x50] sm:$0xff] }
   0x9   :  { %1394 = vmatprep.subr.mxu1 %v1459_v6  ;;  %217 = vst.msk [vmem:[#allocation3 + $0x18] sm:$0xff] %vm209_vm2, %v1459_v6  ;;  %v1330_v13 = vld [vmem:[%s1714_s2 + $0x88] sm:$0xff]  ;;  %v1329_v18 = vld [vmem:[%s1714_s2 + $0x80] sm:$0xff] }
   0xc   :  { %466 = vxpose.xlu0.b32.start [1/2] (short) (narrow) %v235_v15, 8  ;;  %571 = vxpose.xlu1.b32.start [1/2] (short) (narrow) %v237_v16, 8  ;;  %v1581_v43 = vld [vmem:[#allocation2 + $0x8] sm:$0xff]  ;;  %v1332_v16 = vld [vmem:[%s1714_s2 + $0xb8] sm:$0xff] }
   0xd   :  { %v1583_v44 = vld [vmem:[#allocation2] sm:$0xff]  ;;  %v1601_v51 = vld [vmem:[#allocation2 + $0x10] sm:$0xff] }
   0xe   :  { %v1606_v54 = vld [vmem:[#allocation2 + $0x18] sm:$0xff] }
  0x10   :  { %467 = vxpose.xlu0.b32.end [2/2] (short) (narrow) %v236_v19, 8  ;;  %572 = vxpose.xlu1.b32.end [2/2] (short) (narrow) %v238_v20, 8  ;;  %v1331_v19 = vld [vmem:[%s1714_s2 + $0xb0] sm:$0xff] }
  0x2e   :  { %1434 = vset.pattern.permute.xlu1 %v1462_v42 }
  0x39   :  { %1433 = vset.pattern.permute.xlu0 %v1462_v42  ;;  %v744_v42 = vld [vmem:[#allocation3 + $0x18] sm:$0xff] }
  0x80   :  { %v377_v22 = vpop.trf.xlu1  ;;  %v271_v23 = vpop.trf.xlu0 }
  0x81   :  { %1378 = vmatmul.mubr.msk.f32.vlgmr.msra.gmra.mxu0 %vm218_vm0, %v271_v23  ;;  %1385 = vmatmul.mubr.msk.f32.vlgmr.msra.gmra.mxu1 %vm218_vm0, %v377_v22 }
  0x82   :  { %1388 = vmatpush3.msra.mxu0 %v1322_v21  ;;  %1391 = vmatprep.mubr.msk.f32.mxu0 %vm1460_vm1, %v1459_v6 }
  0x83   :  { %1389 = vmatprep.subr.mxu0 %v1459_v6  ;;  %1395 = vmatpush3.msra.mxu1 %v1324_v24 }
  0x84   :  { %1390 = vmatpush3.msra.mxu0 %v1321_v25  ;;  %1396 = vmatprep.subr.mxu1 %v1459_v6 }
  0x85   :  { %1397 = vmatpush3.msra.mxu1 %v1323_v26  ;;  %1398 = vmatprep.mubr.msk.f32.mxu1 %vm1460_vm1, %v1459_v6 }
  0x86   :  { %1401 = vmatprep.subr.mxu0 %v1459_v6  ;;  %1408 = vmatprep.subr.mxu1 %v1459_v6 }
  0x88   :  { %v482_v27 = vpop.trf.xlu0  ;;  %v587_v28 = vpop.trf.xlu1 }
  0x89   :  { %1392 = vmatmul.mubr.msk.f32.vlgmr.msra.gmra.mxu0 %vm218_vm0, %v482_v27  ;;  %1399 = vmatmul.mubr.msk.f32.vlgmr.msra.gmra.mxu1 %vm218_vm0, %v587_v28 }
  0x8a   :  { %1405 = vmatprep.mubr.msk.f32.mxu0 %vm1460_vm1, %v1459_v6  ;;  %1412 = vmatprep.mubr.msk.f32.mxu1 %vm1460_vm1, %v1459_v6 }
  0x8b   :  { %1402 = vmatpush3.xpose.msk.msra.mxu0 %vm680_vm3, %v1326_v55  ;;  %1409 = vmatpush3.xpose.msk.msra.mxu1 %vm680_vm3, %v1328_v56  ;;  %v1087_v55 = vld [vmem:[#allocation4 + $0x8] sm:$0xff] }
  0x8c   :  { %1403 = vmatprep.subr.mxu0 %v1459_v6  ;;  %1410 = vmatprep.subr.mxu1 %v1459_v6 }
  0x8f   :  { %1404 = vmatpush3.xpose.msk.msra.mxu0 %vm680_vm3, %v1325_v60  ;;  %1411 = vmatpush3.xpose.msk.msra.mxu1 %vm680_vm3, %v1327_v61 }
  0x90   :  { %1415 = vmatprep.subr.mxu0 %v1459_v6  ;;  %1422 = vmatprep.subr.mxu1 %v1459_v6 }
 0x141   :  { %v357_v30 = vpop.f32.mrf.mxu0  ;;  %v462_v31 = vpop.f32.mrf.mxu1 }
 0x142   :  { %v684_v32 = vsel %vm680_vm3, %v462_v31, -inf  ;;  %v681_v33 = vsel %vm680_vm3, %v357_v30, -inf }
 0x143   :  { %685 = vmax.xlane.f32.xlu1 %v684_v32  ;;  %v1386_v34 = vpop.f32.mrf.mxu1  ;;  %682 = vmax.xlane.f32.xlu0 %v681_v33  ;;  %v1379_v35 = vpop.f32.mrf.mxu0  ;;  %v741_v32 = vld [vmem:[#allocation3] sm:$0xff] }
 0x149   :  { %v567_v36 = vpop.f32.mrf.mxu0  ;;  %v672_v37 = vpop.f32.mrf.mxu1 }
 0x14a   :  { %v687_v38 = vsel %vm680_vm3, %v567_v36, -inf  ;;  %v690_v41 = vsel %vm680_vm3, %v672_v37, -inf }
 0x14b   :  { %688 = vmax.xlane.f32.xlu1 %v687_v38  ;;  %v1393_v39 = vpop.f32.mrf.mxu0  ;;  %v1400_v40 = vpop.f32.mrf.mxu1 }
 0x14c   :  { %v743_v39 = vld [vmem:[#allocation3 + $0x10] sm:$0xff] }
 0x14f   :  { %691 = vmax.xlane.f32.xlu1 %v690_v41 }
 0x1cc   :  { %v686_v45 = vpop.xlane.xlu1 %685  ;;  %v683_v46 = vpop.xlane.xlu0 %682 }
 0x1cd   :  { %v1586_v47 = vmax.f32 %v1581_v43, %v686_v45  ;;  %v1589_v48 = vmax.f32 %v1583_v44, %v683_v46 }
 0x1cf   :  { %v698_v49 = vsub.f32 %v1581_v43, %v1586_v47  ;;  %1123 = vst.msk [vmem:[#allocation2 + $0x8] sm:$0xff] %vm209_vm2, %v1586_v47  ;;  %v697_v50 = vsub.f32 %v1583_v44, %v1589_v48  ;;  %1122 = vst.msk [vmem:[#allocation2] sm:$0xff] %vm209_vm2, %v1589_v48  ;;  %716 = vperm.xlu1 %1434, %v1586_v47   ;;  %711 = vperm.xlu0 %1433, %v1589_v48  }
 0x1d1   :  { %v703_v20 = vmul.f32 1.442695, %v698_v49  ;;  %v701_v24 = vmul.f32 1.442695, %v697_v50 }
 0x1d4   :  { %v689_v52 = vpop.xlane.xlu1 %688 }
 0x1d5   :  { %v1604_v53 = vmax.f32 %v1601_v51, %v689_v52 }
 0x1d7   :  { %v699_v57 = vsub.f32 %v1601_v51, %v1604_v53  ;;  %1124 = vst.msk [vmem:[#allocation2 + $0x10] sm:$0xff] %vm209_vm2, %v1604_v53  ;;  %721 = vperm.xlu1 %1434, %v1604_v53  }
 0x1d8   :  { %v692_v58 = vpop.xlane.xlu1 %691 }
 0x1d9   :  { %v696_v59 = vmax.f32 %v1606_v54, %v692_v58  ;;  %v705_v25 = vmul.f32 1.442695, %v699_v57  ;;  %v1086_v58 = vld [vmem:[#allocation4] sm:$0xff] }
 0x1db   :  { %v700_v62 = vsub.f32 %v1606_v54, %v696_v59  ;;  %1125 = vst.msk [vmem:[#allocation2 + $0x18] sm:$0xff] %vm209_vm2, %v696_v59  ;;  %726 = vperm.xlu1 %1434, %v696_v59  }
 0x1dd   :  { %v707_v26 = vmul.f32 1.442695, %v700_v62 }
 0x24a   :  { %v717_v63 = vpop.permute.xlu1 %716  ;;  %v712_v0 = vpop.permute.xlu0 %711 }
 0x24b   :  { %v730_v1 = vsub.f32 %v462_v31, %v717_v63  ;;  %v729_v2 = vsub.f32 %v357_v30, %v712_v0  ;;  %v742_v31 = vld [vmem:[#allocation3 + $0x8] sm:$0xff] }
 0x24d   :  { %v735_v3 = vmul.f32 1.442695, %v730_v1  ;;  %v733_v4 = vmul.f32 1.442695, %v729_v2 }
 0x24f   :  { %1435 = vpow2.f32 %v735_v3 }
 0x250   :  { %1437 = vpow2.f32 %v733_v4  ;;  %v1088_v4 = vld [vmem:[#allocation4 + $0x10] sm:$0xff] }
 0x252   :  { %v722_v5 = vpop.permute.xlu1 %721 }
 0x253   :  { %v731_v7 = vsub.f32 %v567_v36, %v722_v5 }
 0x255   :  { %v737_v8 = vmul.f32 1.442695, %v731_v7  ;;  %v1089_v7 = vld [vmem:[#allocation4 + $0x18] sm:$0xff] }
 0x256   :  { %v727_v9 = vpop.permute.xlu1 %726 }
 0x257   :  { %1439 = vpow2.f32 %v737_v8  ;;  %v732_v10 = vsub.f32 %v672_v37, %v727_v9 }
 0x259   :  { %v739_v11 = vmul.f32 1.442695, %v732_v10 }
 0x25b   :  { %1441 = vpow2.f32 %v739_v11 }
 0x25c   :  { %v1436_v12 = vpop.eup %1435  ;;  %1443 = vpow2.f32 %v703_v20 }
 0x25d   :  { %v1438_v14 = vpop.eup %1437  ;;  %1413 = vmatmul.mubr.msk.f32.vlgmr.msra.gmra.mxu1 %vm680_vm3, %v1436_v12  ;;  %v752_v15 = vsel %vm680_vm3, %v1436_v12, 0.0  ;;  %1445 = vpow2.f32 %v701_v24 }
 0x25e   :  { %1406 = vmatmul.mubr.msk.f32.vlgmr.msra.gmra.mxu0 %vm680_vm3, %v1438_v14  ;;  %753 = vadd.xlane.f32.xlu0 %v752_v15  ;;  %v749_v17 = vsel %vm680_vm3, %v1438_v14, 0.0  ;;  %1447 = vpow2.f32 %v705_v25 }
 0x25f   :  { %1416 = vmatpush3.xpose.msk.msra.mxu0 %vm680_vm3, %v1330_v13  ;;  %750 = vadd.xlane.f32.xlu1 %v749_v17  ;;  %1449 = vpow2.f32 %v707_v26 }
 0x260   :  { %1417 = vmatprep.subr.mxu0 %v1459_v6  ;;  %1423 = vmatpush3.xpose.msk.msra.mxu1 %vm680_vm3, %v1332_v16 }
 0x261   :  { %1419 = vmatprep.mubr.msk.f32.mxu0 %vm1460_vm1, %v1459_v6  ;;  %1424 = vmatprep.subr.mxu1 %v1459_v6 }
 0x262   :  { %1426 = vmatprep.mubr.msk.f32.mxu1 %vm1460_vm1, %v1459_v6 }
 0x263   :  { %1418 = vmatpush3.xpose.msk.msra.mxu0 %vm680_vm3, %v1329_v18 }
 0x264   :  { %v1440_v21 = vpop.eup %1439  ;;  %1425 = vmatpush3.xpose.msk.msra.mxu1 %vm680_vm3, %v1331_v19 }
 0x265   :  { %v755_v22 = vsel %vm680_vm3, %v1440_v21, 0.0 }
 0x266   :  { %1420 = vmatmul.mubr.msk.f32.vlgmr.msra.gmra.mxu0 %vm680_vm3, %v1440_v21  ;;  %756 = vadd.xlane.f32.xlu1 %v755_v22 }
 0x268   :  { %v1442_v23 = vpop.eup %1441 }
 0x269   :  { %1427 = vmatmul.mubr.msk.f32.vlgmr.msra.gmra.mxu1 %vm680_vm3, %v1442_v23  ;;  %v758_v6 = vsel %vm680_vm3, %v1442_v23, 0.0  ;;  %v1444_v27 = vpop.eup %1443 }
 0x26a   :  { %759 = vadd.xlane.f32.xlu1 %v758_v6  ;;  %v1446_v28 = vpop.eup %1445  ;;  %v746_v33 = vmul.f32 %v1444_v27, %v742_v31 }
 0x26b   :  { %v1448_v29 = vpop.eup %1447  ;;  %v745_v34 = vmul.f32 %v1446_v28, %v741_v32 }
 0x26c   :  { %v1450_v30 = vpop.eup %1449  ;;  %v747_v40 = vmul.f32 %v1448_v29, %v743_v39 }
 0x26d   :  { %v748_v45 = vmul.f32 %v1450_v30, %v744_v42 }
 0x274   :  { %1097 = vperm.xlu0 %1433, %v1444_v27  }
 0x27b   :  { %1092 = vperm.xlu1 %1434, %v1446_v28  }
 0x27f   :  { %1102 = vperm.xlu1 %1434, %v1448_v29  }
 0x283   :  { %1107 = vperm.xlu1 %1434, %v1450_v30  }
 0x2e7   :  { %v754_v35 = vpop.xlane.xlu0 %753 }
 0x2e8   :  { %v751_v36 = vpop.xlane.xlu1 %750  ;;  %v762_v37 = vadd.f32 %v754_v35, %v746_v33 }
 0x2e9   :  { %v761_v38 = vadd.f32 %v751_v36, %v745_v34 }
 0x2ea   :  { %767 = vst.msk [vmem:[#allocation3 + $0x8] sm:$0xff] %vm209_vm2, %v762_v37 }
 0x2eb   :  { %766 = vst.msk [vmem:[#allocation3] sm:$0xff] %vm209_vm2, %v761_v38 }
 0x2ef   :  { %v757_v41 = vpop.xlane.xlu1 %756  ;;  %v1098_v56 = vpop.permute.xlu0 %1097 }
 0x2f0   :  { %v763_v43 = vadd.f32 %v757_v41, %v747_v40  ;;  %v1111_v59 = vmul.f32 %v1098_v56, %v1087_v55 }
 0x2f1   :  { %v1130_v44 = vld [vmem:[#allocation3 + $0x8] sm:$0xff] }
 0x2f2   :  { %768 = vst.msk [vmem:[#allocation3 + $0x10] sm:$0xff] %vm209_vm2, %v763_v43  ;;  %1451 = vrcp.f32 %v1130_v44  ;;  %v1129_v46 = vld [vmem:[#allocation3] sm:$0xff] }
 0x2f3   :  { %v760_v47 = vpop.xlane.xlu1 %759  ;;  %1453 = vrcp.f32 %v1129_v46 }
 0x2f4   :  { %v764_v48 = vadd.f32 %v760_v47, %v748_v45 }
 0x2f6   :  { %769 = vst.msk [vmem:[#allocation3 + $0x18] sm:$0xff] %vm209_vm2, %v764_v48 }
 0x2f7   :  { %v1093_v57 = vpop.permute.xlu1 %1092 }
 0x2f8   :  { %v1110_v60 = vmul.f32 %v1093_v57, %v1086_v58 }
 0x2f9   :  { %v1131_v49 = vld [vmem:[#allocation3 + $0x10] sm:$0xff] }
 0x2fa   :  { %1455 = vrcp.f32 %v1131_v49 }
 0x2fb   :  { %v1103_v0 = vpop.permute.xlu1 %1102 }
 0x2fc   :  { %v1112_v5 = vmul.f32 %v1103_v0, %v1088_v4 }
 0x2fd   :  { %v1132_v50 = vld [vmem:[#allocation3 + $0x18] sm:$0xff] }
 0x2fe   :  { %1457 = vrcp.f32 %v1132_v50 }
 0x2ff   :  { %v1452_v51 = vpop.eup %1451  ;;  %v1108_v8 = vpop.permute.xlu1 %1107 }
 0x300   :  { %v1454_v52 = vpop.eup %1453  ;;  %1148 = vperm.xlu0 %1433, %v1452_v51   ;;  %v1113_v11 = vmul.f32 %v1108_v8, %v1089_v7 }
 0x301   :  { %1143 = vperm.xlu1 %1434, %v1454_v52  }
 0x307   :  { %v1456_v53 = vpop.eup %1455 }
 0x308   :  { %1153 = vperm.xlu1 %1434, %v1456_v53  }
 0x30b   :  { %v1458_v54 = vpop.eup %1457 }
 0x30c   :  { %1158 = vperm.xlu0 %1433, %v1458_v54  }
 0x31d   :  { %v924_v61 = vpop.f32.mrf.mxu1 }
 0x31e   :  { %v845_v62 = vpop.f32.mrf.mxu0  ;;  %v1115_v63 = vadd.f32 %v1111_v59, %v924_v61 }
 0x31f   :  { %v1114_v1 = vadd.f32 %v1110_v60, %v845_v62  ;;  %v1414_v2 = vpop.f32.mrf.mxu1 }
 0x320   :  { %1119 = vst.msk [vmem:[#allocation4 + $0x8] sm:$0xff] %vm218_vm0, %v1115_v63  ;;  %v1407_v3 = vpop.f32.mrf.mxu0 }
 0x321   :  { %1118 = vst.msk [vmem:[#allocation4] sm:$0xff] %vm218_vm0, %v1114_v1 }
 0x326   :  { %v1003_v9 = vpop.f32.mrf.mxu0 }
 0x327   :  { %v1116_v10 = vadd.f32 %v1112_v5, %v1003_v9  ;;  %v1138_v16 = vld [vmem:[#allocation4 + $0x8] sm:$0xff] }
 0x328   :  { %v1421_v12 = vpop.f32.mrf.mxu0  ;;  %v1137_v19 = vld [vmem:[#allocation4] sm:$0xff] }
 0x329   :  { %1120 = vst.msk [vmem:[#allocation4 + $0x10] sm:$0xff] %vm218_vm0, %v1116_v10  ;;  %v1082_v13 = vpop.f32.mrf.mxu1 }
 0x32a   :  { %v1117_v14 = vadd.f32 %v1113_v11, %v1082_v13 }
 0x32b   :  { %v1428_v15 = vpop.f32.mrf.mxu1 }
 0x32c   :  { %1121 = vst.msk [vmem:[#allocation4 + $0x18] sm:$0xff] %vm218_vm0, %v1117_v14 }
 0x330   :  { %v1139_v22 = vld [vmem:[#allocation4 + $0x10] sm:$0xff] }
 0x333   :  { %v1140_v25 = vld [vmem:[#allocation4 + $0x18] sm:$0xff] }
 0x37b   :  { %v1149_v17 = vpop.permute.xlu0 %1148 }
 0x37c   :  { %v1162_v18 = vmul.f32 %v1149_v17, %v1138_v16  ;;  %v1144_v20 = vpop.permute.xlu1 %1143 }
 0x37d   :  { %v1161_v21 = vmul.f32 %v1144_v20, %v1137_v19 }
 0x37e   :  { %1197 = vxpose.xlu0.b32.start.end [1/1] (short) (narrow) %v1162_v18, 16 }
 0x37f   :  { %1165 = vxpose.xlu1.b32.start.end [1/1] (short) (narrow) %v1161_v21, 16 }
 0x383   :  { %v1154_v23 = vpop.permute.xlu1 %1153 }
 0x384   :  { %v1163_v24 = vmul.f32 %v1154_v23, %v1139_v22 }
 0x386   :  { %1229 = vxpose.xlu0.b32.start.end [1/1] (short) (narrow) %v1163_v24, 16 }
 0x387   :  { %v1159_v6 = vpop.permute.xlu0 %1158 }
 0x388   :  { %v1164_v26 = vmul.f32 %v1159_v6, %v1140_v25 }
 0x38b   :  { %1261 = vxpose.xlu0.b32.start.end [1/1] (short) (narrow) %v1164_v26, 16 }
 0x3fa   :  { %v1213_v27 = vpop.trf.xlu0 }
 0x3fb   :  { %1295 = vst.msk [vmem:[%s1715_s3 + $0x10] sm:$0xff] %vm680_vm3, %v1213_v27  ;;  %v1181_v28 = vpop.trf.xlu1 }
 0x3fc   :  { %1293 = vst.msk [vmem:[%s1715_s3] sm:$0xff] %vm680_vm3, %v1181_v28 }
 0x3fe   :  { %v1214_v29 = vpop.trf.xlu0 }
 0x3ff   :  { %1296 = vst.msk [vmem:[%s1715_s3 + $0x18] sm:$0xff] %vm680_vm3, %v1214_v29  ;;  %v1182_v30 = vpop.trf.xlu1 }
 0x400   :  { %1294 = vst.msk [vmem:[%s1715_s3 + $0x8] sm:$0xff] %vm680_vm3, %v1182_v30 }
 0x402   :  { %v1245_v31 = vpop.trf.xlu0 }
 0x403   :  { %1297 = vst.msk [vmem:[%s1715_s3 + $0x20] sm:$0xff] %vm680_vm3, %v1245_v31 }
 0x406   :  { %v1246_v32 = vpop.trf.xlu0 }
 0x407   :  { %1298 = vst.msk [vmem:[%s1715_s3 + $0x28] sm:$0xff] %vm680_vm3, %v1246_v32 }
 0x40a   :  { %v1277_v33 = vpop.trf.xlu0 }
 0x40b   :  { %1299 = vst.msk [vmem:[%s1715_s3 + $0x30] sm:$0xff] %vm680_vm3, %v1277_v33 }
 0x40e   :  { %v1278_v34 = vpop.trf.xlu0 }
 0x40f   :  { %1300 = vst.msk [vmem:[%s1715_s3 + $0x38] sm:$0xff] %vm680_vm3, %v1278_v34 }

</bundles_post_ra>
